<compile_context>
chip_gen: v7x
topology: tpu7x:2x2x1
jax: 0.10.0
libtpu: 0.0.40
codegen_flags: <defaults>
</compile_context>

<pallas_src>
import functools

import jax
import jax.numpy as jnp
from jax import lax
from jax.experimental import pallas as pl
from jax.experimental.pallas import tpu as pltpu


def _causal_attention_kernel(x_ref, wqkv_ref, o_ref, *, scale, d_out):
    x = x_ref[0]                                      # (seq, d_in)

    # Fused QKV projection: one MXU pass with a 3x wider N instead of three
    # skinny matmuls. Inputs are fed in their native dtype; accumulation in f32.
    qkv = jnp.dot(x, wqkv_ref[...],
                  preferred_element_type=jnp.float32)  # (seq, 3*d_out), f32

    # Fold the 1/sqrt(d_out) softmax scale into q (seq*d_out multiplies
    # instead of seq*seq on the scores).
    q = qkv[:, :d_out] * scale
    k = qkv[:, d_out:2 * d_out]
    v = qkv[:, 2 * d_out:]

    # scores = q @ k^T via a last-dim contraction — no explicit k.T, so no
    # XLU transpose / extra VMEM round-trip for k.
    scores = lax.dot_general(
        q, k, dimension_numbers=(((1,), (1,)), ((), ())),
        preferred_element_type=jnp.float32)            # (seq, seq)

    # Causal mask: query i may not attend to key j > i.
    seq = scores.shape[0]
    row = lax.broadcasted_iota(jnp.int32, (seq, seq), 0)
    col = lax.broadcasted_iota(jnp.int32, (seq, seq), 1)
    scores = jnp.where(col > row, -jnp.inf, scores)

    # Numerically stable softmax, all in f32 (v5e has no bf16 VPU/EUP path).
    # The approximate reciprocal runs on the otherwise-idle EUP slot.
    m = jnp.max(scores, axis=-1, keepdims=True)
    p = jnp.exp(scores - m)
    denom = jnp.sum(p, axis=-1, keepdims=True)
    attn = p * pl.reciprocal(denom, approx=True)

    # TODO(synk): nn.Dropout on the attention weights is treated as identity
    # (eval mode / p=0). Training-mode dropout would use pltpu.prng_seed +
    # pltpu.prng_random_bits to build a keep mask in-kernel.

    o_ref[0] = jnp.dot(attn, v,
                       preferred_element_type=jnp.float32).astype(o_ref.dtype)


def causal_attention(x, w_query, w_keys, w_values):
    """x: (batch, seq, d_in); w_*: (d_out, d_in) as in torch nn.Linear.weight."""
    batch, seq, d_in = x.shape
    d_out = w_query.shape[0]
    # Scale always uses the *logical* head dim (matters if d_out is ever padded
    # to 128 for lane density).
    scale = 1.0 / (d_out ** 0.5)

    # Fuse the three projection weights into one (d_in, 3*d_out) matrix so the
    # kernel does a single x @ W_qkv  (== concat of x @ W_torch.T).
    wqkv = jnp.concatenate([w_query.T, w_keys.T, w_values.T], axis=1)

    kernel = functools.partial(_causal_attention_kernel, scale=scale, d_out=d_out)

    return pl.pallas_call(
        kernel,
        out_shape=jax.ShapeDtypeStruct((batch, seq, d_out), x.dtype),
        grid=(batch,),
        in_specs=[
            pl.BlockSpec((1, seq, d_in), lambda b: (b, 0, 0)),
            # Weights stay VMEM-resident across the batch grid.
            pl.BlockSpec((d_in, 3 * d_out), lambda b: (0, 0)),
        ],
        out_specs=pl.BlockSpec((1, seq, d_out), lambda b: (b, 0, 0)),
        # Batch axis is independent -> "parallel" lets v7x shard it across
        # its 2 TensorCores; no-op on v5e/v6e.
        compiler_params=pltpu.CompilerParams(
            dimension_semantics=("parallel",)),
    )(x, wqkv)


def _reference(x, w_query, w_keys, w_values):
    q = x @ w_query.T
    k = x @ w_keys.T
    v = x @ w_values.T
    scores = jnp.einsum("bqd,bkd->bqk", q, k)
    seq = x.shape[1]
    causal = jnp.triu(jnp.ones((seq, seq), dtype=bool), k=1)
    scores = jnp.where(causal[None, :, :], -jnp.inf, scores)
    w = jax.nn.softmax(scores / (k.shape[-1] ** 0.5), axis=-1)
    return jnp.einsum("bqk,bkd->bqd", w, v)


if __name__ == "__main__":
    batch, seq, d_in, d_out = 2, 8, 32, 32

    key = jax.random.PRNGKey(0)
    kx, kq, kk, kv = jax.random.split(key, 4)

    # Deterministic parameter init (mimics torch nn.Linear default:
    # U(-1/sqrt(d_in), 1/sqrt(d_in))), weight shape (d_out, d_in).
    bound = 1.0 / (d_in ** 0.5)
    w_query = jax.random.uniform(kq, (d_out, d_in), jnp.float32, -bound, bound)
    w_keys = jax.random.uniform(kk, (d_out, d_in), jnp.float32, -bound, bound)
    w_values = jax.random.uniform(kv, (d_out, d_in), jnp.float32, -bound, bound)

    x = jax.random.normal(kx, (batch, seq, d_in), jnp.float32)

    out = causal_attention(x, w_query, w_keys, w_values)
    out = jax.block_until_ready(out)

    ref = _reference(x, w_query, w_keys, w_values)
    assert out.shape == (batch, seq, d_out)
    # Tolerance accounts for the EUP approximate reciprocal in the softmax.
    assert jnp.allclose(out, ref, atol=2e-3, rtol=2e-3), "mismatch vs reference"

    print("KERNEL_OK")
</pallas_src>

<mosaic_0001>
module attributes {stable_mosaic.version = 11 : i64} {
  func.func @_causal_attention_kernel(%arg0: i32, %arg1: memref<1x8x32xf32, #tpu.memory_space<vmem>>, %arg2: memref<32x96xf32, #tpu.memory_space<vmem>>, %arg3: memref<1x8x32xf32, #tpu.memory_space<vmem>>) attributes {dimension_semantics = [#tpu.dimension_semantics<parallel>], iteration_bounds = array<i64: 2>, scalar_prefetch = 0 : i64, scratch_operands = 0 : i64, tpu.core_type = #tpu.core_type<tc>, window_params = [{transform_indices = @transform_0, window_bounds = array<i64: 1, 8, 32>}, {pipeline_mode = #tpu.pipeline_mode<synchronous>, transform_indices = @transform_1, window_bounds = array<i64: 32, 96>}, {transform_indices = @transform_2, window_bounds = array<i64: 1, 8, 32>}]} {
    %c0 = arith.constant 0 : index
    %c0_0 = arith.constant 0 : index
    %c0_1 = arith.constant 0 : index
    %0 = vector.load %arg1[%c0, %c0_0, %c0_1] : memref<1x8x32xf32, #tpu.memory_space<vmem>>, vector<1x8x32xf32>
    %1 = vector.shape_cast %0 : vector<1x8x32xf32> to vector<8x32xf32>
    %c0_2 = arith.constant 0 : index
    %c0_3 = arith.constant 0 : index
    %2 = vector.load %arg2[%c0_2, %c0_3] : memref<32x96xf32, #tpu.memory_space<vmem>>, vector<32x96xf32>
    %cst = arith.constant dense<0.000000e+00> : vector<8x96xf32>
    %3 = tpu.matmul %1, %2, %cst {dimension_numbers = #tpu.dot_dimension_numbers<[1], [0], [0], [1], [0, 0, 1, 1], [], []>} : vector<8x32xf32>, vector<32x96xf32>, vector<8x96xf32> -> vector<8x96xf32>
    %4 = vector.extract_strided_slice %3 {offsets = [0, 0], sizes = [8, 32], strides = [1, 1]} : vector<8x96xf32> to vector<8x32xf32>
    %cst_4 = arith.constant 0.176776692 : f32
    %5 = vector.broadcast %cst_4 : f32 to vector<8x32xf32>
    %6 = arith.mulf %4, %5 : vector<8x32xf32>
    %7 = vector.extract_strided_slice %3 {offsets = [0, 32], sizes = [8, 32], strides = [1, 1]} : vector<8x96xf32> to vector<8x32xf32>
    %8 = vector.extract_strided_slice %3 {offsets = [0, 64], sizes = [8, 32], strides = [1, 1]} : vector<8x96xf32> to vector<8x32xf32>
    %cst_5 = arith.constant dense<0.000000e+00> : vector<8x8xf32>
    %9 = tpu.matmul %6, %7, %cst_5 {dimension_numbers = #tpu.dot_dimension_numbers<[1], [1], [0], [0], [0, 0, 1, 0], [], []>} : vector<8x32xf32>, vector<8x32xf32>, vector<8x8xf32> -> vector<8x8xf32>
    %10 = tpu.iota {dimensions = array<i32: 0>} : vector<8x8xi32>
    %11 = tpu.iota {dimensions = array<i32: 1>} : vector<8x8xi32>
    %12 = arith.cmpi sgt, %11, %10 : vector<8x8xi32>
    %cst_6 = arith.constant 0xFF800000 : f32
    %13 = vector.broadcast %cst_6 : f32 to vector<8x8xf32>
    %14 = arith.select %12, %13, %9 : vector<8x8xi1>, vector<8x8xf32>
    %cst_7 = arith.constant dense<0xFF800000> : vector<8xf32>
    %15 = vector.multi_reduction <maximumf>, %14, %cst_7 [1] : vector<8x8xf32> to vector<8xf32>
    %16 = vector.shape_cast %15 : vector<8xf32> to vector<8x1xf32>
    %17 = vector.broadcast %16 : vector<8x1xf32> to vector<8x8xf32>
    %18 = arith.subf %14, %17 : vector<8x8xf32>
    %19 = math.exp %18 : vector<8x8xf32>
    %cst_8 = arith.constant dense<0.000000e+00> : vector<8xf32>
    %20 = vector.multi_reduction <add>, %19, %cst_8 [1] : vector<8x8xf32> to vector<8xf32>
    %21 = vector.shape_cast %20 : vector<8xf32> to vector<8x1xf32>
    %22 = tpu.reciprocal %21 {approx = true} : vector<8x1xf32> -> vector<8x1xf32>
    %23 = vector.broadcast %22 : vector<8x1xf32> to vector<8x8xf32>
    %24 = arith.mulf %19, %23 : vector<8x8xf32>
    %cst_9 = arith.constant dense<0.000000e+00> : vector<8x32xf32>
    %25 = tpu.matmul %24, %8, %cst_9 {dimension_numbers = #tpu.dot_dimension_numbers<[1], [0], [0], [1], [0, 0, 1, 1], [], []>} : vector<8x8xf32>, vector<8x32xf32>, vector<8x32xf32> -> vector<8x32xf32>
    %c0_10 = arith.constant 0 : index
    %c0_11 = arith.constant 0 : index
    %c0_12 = arith.constant 0 : index
    %26 = vector.load %arg3[%c0_10, %c0_11, %c0_12] : memref<1x8x32xf32, #tpu.memory_space<vmem>>, vector<1x8x32xf32>
    %27 = vector.shape_cast %26 : vector<1x8x32xf32> to vector<8x32xf32>
    %28 = vector.shape_cast %25 : vector<8x32xf32> to vector<1x8x32xf32>
    tpu.vector_store %arg3[%c0_10, %c0_11, %c0_12], %28 {strides = array<i32>} : memref<1x8x32xf32, #tpu.memory_space<vmem>>, vector<1x8x32xf32>,
    return
  }
  func.func @transform_0(%arg0: i32) -> (i32, i32, i32) {
    %c0_i32 = arith.constant 0 : i32
    %c0_i32_0 = arith.constant 0 : i32
    %c0_i32_1 = arith.constant 0 : i32
    return %arg0, %c0_i32, %c0_i32_0 : i32, i32, i32
  }
  func.func @transform_1(%arg0: i32) -> (i32, i32) {
    %c0_i32 = arith.constant 0 : i32
    %c0_i32_0 = arith.constant 0 : i32
    %c0_i32_1 = arith.constant 0 : i32
    return %c0_i32, %c0_i32_0 : i32, i32
  }
  func.func @transform_2(%arg0: i32) -> (i32, i32, i32) {
    %c0_i32 = arith.constant 0 : i32
    %c0_i32_0 = arith.constant 0 : i32
    %c0_i32_1 = arith.constant 0 : i32
    return %arg0, %c0_i32, %c0_i32_0 : i32, i32, i32
  }
}

</mosaic_0001>

<bundles_post_ra>
// kernel: tpu_custom_call.1
= control target key start
LH: loop header
LB: loop body
LE: loop exit
PB: predicated region body
PF: predicated region fallthrough
CT: control target
= control target key end

     0   :  { %7 = vsyncpa [#allocation3], 0  ;;  %s1008_s0 = inlined_call_operand.hbm [shape: f32[2,8,32], index: 0, kind: input, shape index: {}]   ;;  %s1009_s1 = inlined_call_operand.hbm [shape: f32[32,96], index: 1, kind: input, shape index: {}]   ;;  %s1010_s2 = inlined_call_operand.hbm [shape: f32[2,8,32], index: 2, kind: output, shape index: {}]  }
   0x1   :  { %9 = vsyncpa [#allocation3 + $0x1], 0 }
   0x2   :  { %10 = vsyncpa [#allocation6], 0 }
   0x3   :  { %11 = vsyncpa [#allocation4], 0 }
   0x4   :  { %13 = vsyncpa [#allocation4 + $0x1], 0  ;;  %s798_s9 = smov 0   ;;  %s800_s10 = smov 0  }
   0x5   :  { %s802_s11 = smov 0   ;;  %s804_s12 = smov 0  }
   0x6 LB: > { %s819_s13 = sadd.s32 4294967295, %s771_s12   ;;  %s521_s14 = sadd.s32 4294967294, %s771_s12   ;;  %s771_s12 = sphi %s804_s12, %s1030_s12   ;;  %s767_s11 = sphi %s802_s11, %s1029_s11   ;;  %s763_s10 = sphi %s800_s10, %s1028_s10   ;;  %s759_s9 = sphi %s798_s9, %s1027_s9  }
   0x7   : > { %p39_p0 = scmp.ne.s32.totalorder %s763_s10, %s759_s9  ;;  %p1011_p1 = scmp.eq.s32.totalorder %s819_s13, 0 }
   0x8   : > { %p90_p3 = scmp.eq.s32.totalorder %s521_s14, 1  ;;  %p522_p5 = scmp.ge.s32.totalorder %s771_s12, 1 }
   0x9   : > { %p828_p4 = por %p1011_p1, %p39_p0  ;;  %p97_p7 = scmp.lt.s32.totalorder %s771_s12, 3 }
   0xa   : > { %p833_p6 = por %p90_p3, %p39_p0  ;;  %s773_s18 = smov [#allocation5]  }
   0xb   : > { %s1014_s15 = scalar_select %p828_p4, 1, 0 }
   0xc   : > { %s1015_s16 = scalar_select %p833_p6, 1, 0 }
   0xd   : > { %p838_p8 = pnand %p522_p5, %p97_p7  ;;  %s109_s19 = sshll.u32 %s773_s18, 4  ;;  %s842_s19 = int_to_ptr.vmem [resolvable:$true] %s109_s19 }
   0xe   : > { %s854_s21 = sadd.s32 1, %s771_s12   ;;  %s26_s22 = sadd.s32 1, %s767_s11 }
   0xf   : > { %s1016_s17 = scalar_select %p838_p8, 1, 0 }
  0x10   : > { %p583_p9 = pneg %p838_p8  ;;  %s23_s23 = ssub.s32 %s771_s12, %s854_s21 }
  0x11   : > { %s643_s26 = scalar_lea.hbm %s1009_s1, 512 }
  0x12   : > { %p849_p11 = pnand %p583_p9, %p1011_p1  ;;  %p644_p12 = scmp.ne.s32.totalorder %s1009_s1, %s643_s26 }
  0x13   : > { %p650_p5 = scmp.lt.u32.totalorder %s643_s26, %s1009_s1 }
  0x14   : > { %p645_p13 = pneg %p849_p11 }
  0x16   : > { %p646_p0 = pnand %p645_p13, %p644_p12 }
  0x18   : > { %p647_p3 = pneg %p646_p0 }
  0x1a   : > { %p652_p7 = pnand %p650_p5, %p647_p3 }
  0x1c   : > { %655 = shalt.err (!%p652_p7)
}
  0x1d   : > { %s656_s3 = scalar_lea.vmem %s842_s19, 512  ;;  %p664_p2 = scmp.lt.s32.totalorder %s842_s19, %s842_s19 }
  0x1e   : > { %p657_p9 = scmp.ne.s32.totalorder %s842_s19, %s656_s3  ;;  %p665_p6 = scmp.lt.s32.totalorder %s656_s3, %s656_s3 }
  0x20   : > { %p659_p10 = pnand %p657_p9, %p645_p13  ;;  %p666_p4 = por %p665_p6, %p664_p2 }
  0x22   : > { %p660_p1 = pneg %p659_p10 }
  0x24   : > { %p667_p8 = pnand %p666_p4, %p660_p1 }
  0x26   : > { %670 = shalt.err (!%p667_p8)
}
  0x27   : > { %s774_s4 = smov 128   ;;  %s775_s5 = smov 8  }
  0x28   : > { %586 = dma.hbm_to_vmem [thread:$0]  (!%p849_p11), %s1009_s1, 512, %s842_s19, [#allocation6], %s774_s4, %s774_s4, %s775_s5  }
  0x29   : > { %p24_p2 = scmp.eq.s32.totalorder %s23_s23, 0  ;;  %p33_p1 = scmp.ne.s32.totalorder %s767_s11, %s763_s10 }
  0x2a   : > { %p34_p4 = scmp.eq.s32.totalorder %s771_s12, 0  ;;  %p596_p6 = scmp.lt.s32.totalorder %s771_s12, 2 }
  0x2b   : > { %s885_s8 = scalar_select %p24_p2, %s767_s11, %s26_s22  }
  0x2c   : > { %p35_p8 = por %p34_p4, %p33_p1  ;;  %p1018_p10 = scmp.eq.s32.totalorder %s819_s13, 1 }
  0x2d   : > { %s123_s18 = sand.u32 1, %s767_s11   ;;  %s526_s24 = sshll.u32 %s771_s12, 7 }
  0x2e   : > { %p889_p12 = por %p1018_p10, %p33_p1  ;;  %s525_s25 = sshll.u32 %s123_s18, 3 }
  0x2f   : > { %s898_s27 = scalar_lea.hbm %s1008_s0, %s526_s24  ;;  %s127_s19 = scalar_lea.vmem [#allocation2], %s525_s25 }
  0x30   : > { %s134_s22 = sshll.u32 %s127_s19, 4  ;;  %p900_p11 = pnand %p596_p6, %p35_p8  ;;  %s904_s22 = int_to_ptr.vmem [resolvable:$true] %s134_s22 }
  0x31   : > { %s124_s28 = scalar_lea.sflag [#allocation3], %s123_s18  ;;  %s671_s29 = scalar_lea.hbm %s898_s27, 128 }
  0x32   : > { %p672_p13 = scmp.ne.s32.totalorder %s898_s27, %s671_s29  ;;  %p673_p0 = pneg %p900_p11 }
  0x33   : > { %s676_s4 = scalar_lea.hbm %s1008_s0, 256  ;;  %p677_p7 = scmp.lt.u32.totalorder %s898_s27, %s1008_s0 }
  0x34   : > { %p674_p3 = pnand %p673_p0, %p672_p13  ;;  %p678_p9 = scmp.lt.u32.totalorder %s676_s4, %s671_s29 }
  0x35   : > { %p680_p1 = scmp.lt.u32.totalorder %s671_s29, %s898_s27 }
  0x36   : > { %p675_p5 = pneg %p674_p3  ;;  %p679_p2 = por %p678_p9, %p677_p7 }
  0x38   : > { %p681_p4 = por %p680_p1, %p679_p2 }
  0x3a   : > { %p682_p6 = pnand %p681_p4, %p675_p5 }
  0x3c   : > { %685 = shalt.err (!%p682_p6)
}
  0x3d   : > { %s686_s7 = scalar_lea.vmem %s904_s22, 128  ;;  %s776_s18 = smov [#allocation2]  }
  0x3e   : > { %p687_p8 = scmp.ne.s32.totalorder %s904_s22, %s686_s7  ;;  %s691_s24 = sshll.u32 %s776_s18, 4  ;;  %s692_s24 = int_to_ptr.vmem [resolvable:$false] %s691_s24 }
  0x3f   : > { %s693_s25 = scalar_lea.vmem %s692_s24, 256  ;;  %p694_p3 = scmp.lt.s32.totalorder %s904_s22, %s692_s24 }
  0x40   : > { %p689_p10 = pnand %p687_p8, %p673_p0  ;;  %p695_p7 = scmp.lt.s32.totalorder %s693_s25, %s686_s7 }
  0x42   : > { %p690_p13 = pneg %p689_p10  ;;  %p696_p9 = por %p695_p7, %p694_p3 }
  0x44   : > { %p697_p2 = pnand %p696_p9, %p690_p13 }
  0x46   : > { %700 = shalt.err (!%p697_p2)
}
  0x47   : > { %590 = dma.hbm_to_vmem [thread:$0]  (!%p900_p11), %s898_s27, 128, %s904_s22, %s124_s28  }
  0x48   : > { %p1021_p5 = scmp.ne.s32.totalorder %s1016_s17, 0 }
  0x49   : > { %s934_s20 = sand.u32 (!%p1021_p5), 1, %s763_s10   ;;  %p1022_p0 = scmp.ne.s32.totalorder (!%p1021_p5), %s1014_s15, 0 }
  0x4a   : > { %143 = sbr.rel (%p1021_p5) target bundleno = 1178 (0x49a), region = 28  ;;  %s528_s26 = sshll.u32 (!%p1021_p5), %s934_s20, 3 }
  0x4b   : > { %s146_s19 = scalar_lea.sflag (!%p1021_p5), [#allocation3], %s934_s20  ;;  %s149_s29 = scalar_lea.vmem (!%p1021_p5), [#allocation2], %s528_s26 }
  0x51   : > { %746 = dma.done.wait (%p1022_p0), %s146_s19, 128  }
  0x52   : > { %748 = vsyncadd (%p1022_p0), %s146_s19, 4294967168  ;;  %p1023_p11 = scmp.eq.s32.totalorder %s819_s13, 0 }
  0x54   : > { %750 = dma.done.wait (%p1023_p11), [#allocation6], 512   ;;  %p1024_p1 = pmov %p1023_p11 }
  0x55   : > { %v777_v0 = vmov 0.0|0.0   ;;  %vm778_vm0 = vmmov 0   ;;  %v779_v1 = vmov 0.0   ;;  %v175_v2 = vld [vmem:[#allocation5] sm:$0xff]  ;;  %v176_v3 = vld [vmem:[#allocation5 + $0x8] sm:$0xff]  ;;  %v177_v4 = vld [vmem:[#allocation5 + $0x10] sm:$0xff]  ;;  %v332_v13 = vlaneseq }
  0x56   : > { %752 = vsyncadd (%p1024_p1), [#allocation6], 4294966784  ;;  %569 = vmatprep.subr.bf16.mxu0 %v777_v0  ;;  %556 = vmatprep.mubr.msk.f32.mxu0 %vm778_vm0, %v779_v1  ;;  %v570_v5 = vpack.c.bf16 %v176_v3, %v175_v2  ;;  %v178_v6 = vld [vmem:[#allocation5 + $0x18] sm:$0xff]  ;;  %vm179_vm1 = vcmask 261120   ;;  %s780_s15 = smov 96   ;;  %vm338_vm3 = vcmask 64512  }
  0x57   : > { %559 = vmatprep.subr.mxu1 %v779_v1  ;;  %561 = vmatprep.mubr.msk.f32.mxu1 %vm778_vm0, %v779_v1  ;;  %v573_v7 = vpack.c.bf16 %v178_v6, %v177_v4  ;;  %v174_v8 = vld [vmem:[%s149_s29] sm:$0xff]  ;;  %v333_v14 = vshrl.u32 %v332_v13, 7  ;;  %v335_v15 = vand.u32 127, %v332_v13  ;;  %s781_s17 = smov 64   ;;  %s536_s27 = sshll.u32 %s819_s13, 7 }
  0x58   : > { %571 = vmatpush3.bf16.msra.mxu0 %v570_v5  ;;  %s173_s22 = scalar_lea.vmem [#allocation7], %s528_s26  ;;  %s963_s3 = scalar_lea.hbm %s1010_s2, %s536_s27 }
  0x59   : > { %572 = vmatprep.subr.bf16.mxu0 %v777_v0  ;;  %vm336_vm2 = vcmp.gt.s32.totalorder %v335_v15, %v333_v14  ;;  %s441_s23 = sshll.u32 %s173_s22, 4  ;;  %s428_s4 = scalar_lea.sflag [#allocation4], %s934_s20  ;;  %s965_s23 = int_to_ptr.vmem [resolvable:$true] %s441_s23 }
  0x5a   : > { %s701_s5 = scalar_lea.vmem %s965_s23, 128  ;;  %s782_s13 = smov [#allocation7]  }
  0x5b   : > { %p702_p4 = scmp.ne.s32.totalorder %s965_s23, %s701_s5  ;;  %s705_s6 = sshll.u32 %s782_s13, 4  ;;  %s706_s6 = int_to_ptr.vmem [resolvable:$false] %s705_s6 }
  0x5c   : > { %574 = vmatpush3.bf16.msra.mxu0 %v573_v7  ;;  %s707_s7 = scalar_lea.vmem %s706_s6, 256  ;;  %p708_p10 = scmp.lt.s32.totalorder %s965_s23, %s706_s6 }
  0x5d   : > { %p703_p6 = pnand %p702_p4, %p889_p12  ;;  %p709_p13 = scmp.lt.s32.totalorder %s707_s7, %s701_s5 }
  0x5f   : > { %557 = vmatmul.mubr.msk.f32.vlgmr.msra.gmra.mrb[0].mxu0 %vm179_vm1, %v174_v8  ;;  %p704_p8 = pneg %p703_p6  ;;  %p710_p3 = por %p709_p13, %p708_p10 }
  0x61   : > { %p711_p7 = pnand %p710_p3, %p704_p8 }
 0x132   : > { %v249_v9 = vpop.f32.mrb[0].mxu0 }
 0x133   : > { %255 = vrot.lane.b32.xlu0 %v249_v9, %s780_s15  ;;  %v558_v10 = vpop.f32.mrb[1].mxu0  ;;  %v253_v12 = vmul.f32 0.17677669, %v249_v9 }
 0x1a5   : > { %v256_v11 = vpop.permute.xlu0 %255 }
 0x1a6   : > { %560 = vmatpush3.xpose.msk.msra.mxu1 %vm179_vm1, %v256_v11 }
 0x1a7   : > { %564 = vmatprep.subr.mxu1 %v779_v1 }
 0x1a9   : > { %562 = vmatmul.mubr.msk.f32.vlgmr.msra.gmra.mrb[0].mxu1 %vm179_vm1, %v253_v12 }
 0x1aa   : > { %566 = vmatprep.mubr.msk.f32.mxu1 %vm778_vm0, %v779_v1 }
 0x27c   : > { %v328_v16 = vpop.f32.mrb[0].mxu1 }
 0x27d   : > { %v337_v17 = vsel %vm336_vm2, -inf, %v328_v16  ;;  %v563_v18 = vpop.f32.mrb[1].mxu1 }
 0x27e   : > { %v339_v19 = vsel %vm338_vm3, %v337_v17, -inf }
 0x27f   : > { %340 = vmax.xlane.f32.xlu0 %v339_v19 }
 0x30c   : > { %v341_v20 = vpop.xlane.xlu0 %340 }
 0x30d   : > { %v342_v21 = vsub.f32 %v337_v17, %v341_v20 }
 0x30f   : > { %v343_v22 = vmul.f32 1.442695, %v342_v21 }
 0x311   : > { %639 = vpow2.f32 %v343_v22 }
 0x31b   : > { %v640_v23 = vpop.eup %639 }
 0x31c   : > { %v345_v24 = vsel %vm338_vm3, %v640_v23, 0.0 }
 0x31d   : > { %346 = vadd.xlane.f32.xlu1 %v345_v24 }
 0x32e   : > { %350 = vrot.lane.b32.xlu1 %v249_v9, %s781_s17 }
 0x3aa   : > { %v347_v25 = vpop.xlane.xlu1 %346 }
 0x3ab   : > { %641 = vrcp.f32 %v347_v25 }
 0x3ae   : > { %v351_v26 = vpop.permute.xlu1 %350 }
 0x3af   : > { %565 = vmatpush3.msra.mxu1 %v351_v26 }
 0x3b5   : > { %v642_v27 = vpop.eup %641 }
 0x3b6   : > { %v349_v28 = vmul.f32 %v642_v27, %v640_v23 }
 0x3b8   : > { %567 = vmatmul.mubr.msk.f32.vlgmr.msra.gmra.mrb[2].mxu1 %vm338_vm3, %v349_v28 }
 0x48b   : > { %v422_v29 = vpop.f32.mrb[2].mxu1 }
 0x48c   : > { %426 = vst.msk [vmem:[%s173_s22] sm:$0xff] %vm179_vm1, %v422_v29  ;;  %v568_v30 = vpop.f32.mrb[3].mxu1 }
 0x48d   : > { %714 = shalt.err (!%p711_p7)
}
 0x48e   : > { %s715_s18 = scalar_lea.hbm %s963_s3, 128  ;;  %s719_s20 = scalar_lea.hbm %s1010_s2, 256 }
 0x48f   : > { %p716_p9 = scmp.ne.s32.totalorder %s963_s3, %s715_s18  ;;  %p720_p0 = scmp.lt.u32.totalorder %s963_s3, %s1010_s2 }
 0x490   : > { %p721_p11 = scmp.lt.u32.totalorder %s719_s20, %s715_s18  ;;  %p723_p4 = scmp.lt.u32.totalorder %s715_s18, %s963_s3 }
 0x491   : > { %p717_p2 = pnand %p716_p9, %p889_p12 }
 0x492   : > { %p722_p1 = por %p721_p11, %p720_p0 }
 0x493   : > { %p718_p5 = pneg %p717_p2 }
 0x494   : > { %p724_p6 = por %p723_p4, %p722_p1 }
 0x496   : > { %p725_p8 = pnand %p724_p6, %p718_p5 }
 0x498   : > { %728 = shalt.err (!%p725_p8)
}
 0x499   : > { %581 = dma.vmem_to_hbm [thread:$0]  (%p889_p12), %s965_s23, 128, %s963_s3, %s428_s4  }
 0x49a PF: > { %s453_s29 = sand.u32 1, %s759_s9   ;;  %p1025_p10 = scmp.ne.s32.totalorder %s1015_s16, 0 }
 0x49b   : > { %p1026_p13 = scmp.ge.s32.totalorder %s771_s12, 2  ;;  %s454_s15 = scalar_lea.sflag [#allocation4], %s453_s29 }
 0x49d   : > { %p592_p3 = pnand %p1026_p13, %p1025_p10 }
 0x49f   : > { %754 = dma.done.wait (!%p592_p3), %s454_s15, 128  }
 0x4a0   : > { %756 = vsyncadd (!%p592_p3), %s454_s15, 4294967168  ;;  %p16_p7 = scmp.ge.s32.totalorder %s854_s21, 4   ;;  %s1027_s9 = smov %s763_s10 }
 0x4a1   : > { %s1028_s10 = smov %s767_s11  ;;  %s1029_s11 = smov %s885_s8 }
 0x4a2   : > { %s1030_s12 = smov %s854_s21  ;;  %18 = sbr.rel (!%p16_p7) target bundleno = 6 (0x6), region = 77 }
 0x4a9   :  { %459 = vsyncpa [#allocation3], 1 }
 0x4aa   :  { %461 = vsyncpa [#allocation3 + $0x1], 1 }
 0x4ab   :  { %462 = vsyncpa [#allocation6], 1 }
 0x4ac   :  { %463 = vsyncpa [#allocation4], 1 }
 0x4ad   :  { %465 = vsyncpa [#allocation4 + $0x1], 1 }

</bundles_post_ra>
